<compile_context>
chip_gen: v5e
topology: v5e:2x2
jax: 0.10.0
libtpu: 0.0.40
codegen_flags: <defaults>
</compile_context>

<pallas_src>
import jax
import jax.numpy as jnp
import numpy as np
from jax.experimental import pallas as pl
from jax.experimental.pallas import tpu as pltpu

FC_DIM = 64
OUT_DIM = 10
TM_MAX = 2048          # max rows per batch tile (amortizes ~0.35 us/grid-step)
SINGLE_TILE_MAX = 512  # at or below this, a single tile is best (no split overhead)


def _cdiv(a, b):
    return (a + b - 1) // b


def _round_up(n, m):
    return ((n + m - 1) // m) * m


def _linear_kernel(x_ref, w_ref, b_ref, o_ref):
    # x_ref: (TM, 64)  w_ref: (64, 10)  b_ref: (1, 10)  o_ref: (TM, 10)
    # Single MXU matmul (f32 accumulation) + VPU bias broadcast over rows.
    o_ref[...] = (
        jnp.dot(x_ref[...], w_ref[...], preferred_element_type=jnp.float32)
        + b_ref[...]
    )


def _batch_tiling(batch):
    """Choose (tile_rows, num_tiles, padded_rows) for the batch axis.

    tile_rows is a sublane multiple (8). For batch > SINGLE_TILE_MAX we pick an
    even number of equal tiles so v7x's two TensorCores get balanced work.
    Padding is at most 8*num_tiles rows.
    """
    if batch <= SINGLE_TILE_MAX:
        n_tiles = 1
    else:
        n_tiles = max(2, _cdiv(batch, TM_MAX))
        if n_tiles % 2:
            n_tiles += 1
    tm = _round_up(_cdiv(batch, n_tiles), 8)
    return tm, n_tiles, tm * n_tiles


def mlp_out_forward(x, w_t, b):
    """Pallas equivalent of MLP_OUT.forward: h1 = fc0(x).

    x:   (B, FC_DIM) float32
    w_t: (FC_DIM, OUT_DIM) float32  -- pre-transposed nn.Linear weight (see prepare_params)
    b:   (1, OUT_DIM) float32       -- pre-reshaped bias
    returns (B, OUT_DIM) float32
    """
    B = x.shape[0]
    tm, n_tiles, b_rows = _batch_tiling(B)

    # Tiny tail pad only (<= 8 rows per tile); padded rows produce bias-only
    # values that are stripped below.
    if b_rows != B:
        x = jnp.pad(x, ((0, b_rows - B), (0, 0)))

    out = pl.pallas_call(
        _linear_kernel,
        out_shape=jax.ShapeDtypeStruct((b_rows, OUT_DIM), jnp.float32),
        grid_spec=pltpu.PrefetchScalarGridSpec(
            num_scalar_prefetch=0,
            grid=(n_tiles,),
            in_specs=[
                # x: tiled along the batch axis, software-pipelined DMA.
                pl.BlockSpec((tm, FC_DIM), lambda i: (i, 0)),
                # weight / bias: constant index map -> VMEM-resident across tiles.
                pl.BlockSpec((FC_DIM, OUT_DIM), lambda i: (0, 0)),
                pl.BlockSpec((1, OUT_DIM), lambda i: (0, 0)),
            ],
            out_specs=pl.BlockSpec((tm, OUT_DIM), lambda i: (i, 0)),
        ),
        compiler_params=pltpu.CompilerParams(
            # Batch tiles are independent -> shard across v7x's 2 TensorCores.
            dimension_semantics=("parallel",),
        ),
    )(x, w_t, b)

    return out if b_rows == B else out[:B]


def prepare_params(w_torch_layout, b_vec):
    """One-time conversion from PyTorch layout to kernel layout.

    w_torch_layout: (OUT_DIM, FC_DIM) as nn.Linear stores it.
    b_vec:          (OUT_DIM,)
    Returns (w_t, b) with shapes (FC_DIM, OUT_DIM) and (1, OUT_DIM), float32.
    """
    w_t = jnp.asarray(w_torch_layout, jnp.float32).T
    b = jnp.asarray(b_vec, jnp.float32).reshape(1, OUT_DIM)
    return w_t, b


def init_params(key):
    """Deterministic init matching nn.Linear(64, 10) default (uniform ±1/sqrt(in))."""
    kw, kb = jax.random.split(key)
    bound = 1.0 / np.sqrt(FC_DIM)
    w = jax.random.uniform(kw, (OUT_DIM, FC_DIM), jnp.float32, -bound, bound)
    b = jax.random.uniform(kb, (OUT_DIM,), jnp.float32, -bound, bound)
    return prepare_params(w, b)


if __name__ == "__main__":
    key = jax.random.PRNGKey(0)
    k_in, k_param = jax.random.split(key)

    # Small demo batch (single-tile path).
    B = 8
    x = jax.random.normal(k_in, (B, FC_DIM), dtype=jnp.float32)
    w_t, b = init_params(k_param)

    out = jax.block_until_ready(mlp_out_forward(x, w_t, b))

    ref = x @ w_t + b
    np.testing.assert_allclose(np.asarray(out), np.asarray(ref), rtol=1e-5, atol=1e-5)
    assert out.shape == (B, OUT_DIM)

    # Larger, non-multiple batch: exercises the even 2-tile split + small tail pad.
    B2 = 1030
    x2 = jax.random.normal(jax.random.PRNGKey(1), (B2, FC_DIM), dtype=jnp.float32)
    out2 = jax.block_until_ready(mlp_out_forward(x2, w_t, b))
    ref2 = x2 @ w_t + b
    np.testing.assert_allclose(np.asarray(out2), np.asarray(ref2), rtol=1e-5, atol=1e-5)
    assert out2.shape == (B2, OUT_DIM)

    print("KERNEL_OK")
</pallas_src>

<mosaic_0001>
module attributes {stable_mosaic.version = 11 : i64} {
  func.func @_linear_kernel(%arg0: i32, %arg1: memref<8x64xf32, #tpu.memory_space<vmem>>, %arg2: memref<64x10xf32, #tpu.memory_space<vmem>>, %arg3: memref<1x10xf32, #tpu.memory_space<vmem>>, %arg4: memref<8x10xf32, #tpu.memory_space<vmem>>) attributes {dimension_semantics = [#tpu.dimension_semantics<parallel>], iteration_bounds = array<i64: 1>, scalar_prefetch = 0 : i64, scratch_operands = 0 : i64, tpu.core_type = #tpu.core_type<tc>, window_params = [{transform_indices = @transform_0, window_bounds = array<i64: 8, 64>}, {pipeline_mode = #tpu.pipeline_mode<synchronous>, transform_indices = @transform_1, window_bounds = array<i64: 64, 10>}, {pipeline_mode = #tpu.pipeline_mode<synchronous>, transform_indices = @transform_2, window_bounds = array<i64: 1, 10>}, {transform_indices = @transform_3, window_bounds = array<i64: 8, 10>}]} {
    %c0 = arith.constant 0 : index
    %c0_0 = arith.constant 0 : index
    %0 = vector.load %arg1[%c0, %c0_0] : memref<8x64xf32, #tpu.memory_space<vmem>>, vector<8x64xf32>
    %c0_1 = arith.constant 0 : index
    %c0_2 = arith.constant 0 : index
    %1 = vector.load %arg2[%c0_1, %c0_2] : memref<64x10xf32, #tpu.memory_space<vmem>>, vector<64x10xf32>
    %cst = arith.constant dense<0.000000e+00> : vector<8x10xf32>
    %2 = tpu.matmul %0, %1, %cst {dimension_numbers = #tpu.dot_dimension_numbers<[1], [0], [0], [1], [0, 0, 1, 1], [], []>} : vector<8x64xf32>, vector<64x10xf32>, vector<8x10xf32> -> vector<8x10xf32>
    %c0_3 = arith.constant 0 : index
    %c0_4 = arith.constant 0 : index
    %3 = vector.load %arg3[%c0_3, %c0_4] : memref<1x10xf32, #tpu.memory_space<vmem>>, vector<1x10xf32>
    %4 = vector.broadcast %3 : vector<1x10xf32> to vector<8x10xf32>
    %5 = arith.addf %2, %4 : vector<8x10xf32>
    %c0_5 = arith.constant 0 : index
    %c0_6 = arith.constant 0 : index
    %6 = vector.load %arg4[%c0_5, %c0_6] : memref<8x10xf32, #tpu.memory_space<vmem>>, vector<8x10xf32>
    tpu.vector_store %arg4[%c0_5, %c0_6], %5 {strides = array<i32>} : memref<8x10xf32, #tpu.memory_space<vmem>>, vector<8x10xf32>,
    return
  }
  func.func @transform_0(%arg0: i32) -> (i32, i32) {
    %c0_i32 = arith.constant 0 : i32
    %c0_i32_0 = arith.constant 0 : i32
    return %arg0, %c0_i32 : i32, i32
  }
  func.func @transform_1(%arg0: i32) -> (i32, i32) {
    %c0_i32 = arith.constant 0 : i32
    %c0_i32_0 = arith.constant 0 : i32
    %c0_i32_1 = arith.constant 0 : i32
    return %c0_i32, %c0_i32_0 : i32, i32
  }
  func.func @transform_2(%arg0: i32) -> (i32, i32) {
    %c0_i32 = arith.constant 0 : i32
    %c0_i32_0 = arith.constant 0 : i32
    %c0_i32_1 = arith.constant 0 : i32
    return %c0_i32, %c0_i32_0 : i32, i32
  }
  func.func @transform_3(%arg0: i32) -> (i32, i32) {
    %c0_i32 = arith.constant 0 : i32
    %c0_i32_0 = arith.constant 0 : i32
    return %arg0, %c0_i32 : i32, i32
  }
}

</mosaic_0001>

<bundles_post_ra>
// kernel: tpu_custom_call.1
= control target key start
LH: loop header
LB: loop body
LE: loop exit
PB: predicated region body
PF: predicated region fallthrough
CT: control target
= control target key end

     0   :  { %s153_s0 = inlined_call_operand.vmem [shape: f32[8,64], index: 0, kind: input, shape index: {}]   ;;  %s154_s1 = inlined_call_operand.vmem [shape: f32[64,10], index: 1, kind: input, shape index: {}]   ;;  %s155_s2 = inlined_call_operand.vmem [shape: f32[1,10], index: 2, kind: input, shape index: {}]   ;;  %s156_s3 = inlined_call_operand.hbm [shape: f32[8,10], index: 3, kind: output, shape index: {}]  }
   0x1   :  { %v23_v0 = vld [vmem:[%s154_s1 + $0x38] sm:$0xff]  ;;  %v22_v1 = vld [vmem:[%s154_s1 + $0x30] sm:$0xff]  ;;  %v21_v2 = vld [vmem:[%s154_s1 + $0x28] sm:$0xff] }
   0x2   :  { %40 = vmatpush.msra.mxu0 %v23_v0 }
   0x4   :  { %41 = vmatpush.msra.mxu0 %v22_v1 }
   0x5   :  { %8 = vsyncpa [#allocation3], 0  ;;  %v20_v3 = vld [vmem:[%s154_s1 + $0x20] sm:$0xff]  ;;  %v19_v4 = vld [vmem:[%s154_s1 + $0x18] sm:$0xff]  ;;  %vm28_vm0 = vcmask 523264   ;;  %s99_s5 = smov [#allocation2]  }
   0x6   :  { %42 = vmatpush.msra.mxu0 %v21_v2  ;;  %v18_v5 = vld [vmem:[%s154_s1 + $0x10] sm:$0xff]  ;;  %v17_v6 = vld [vmem:[%s154_s1 + $0x8] sm:$0xff]  ;;  %v16_v7 = vld [vmem:[%s154_s1] sm:$0xff]  ;;  %s59_s6 = sshll.u32 %s99_s5, 4  ;;  %s61_s9 = sshll.u32 %s156_s3, 4  ;;  %vm52_vm1 = vcmask 80896   ;;  %s60_s6 = int_to_ptr.vmem [resolvable:$true] %s59_s6  ;;  %s62_s9 = int_to_ptr.hbm [resolvable:$true] %s61_s9 }
   0x7   :  { %v15_v8 = vld [vmem:[%s153_s0] sm:$0xff] }
   0x8   :  { %43 = vmatpush.msra.mxu0 %v20_v3  ;;  %v72_v9 = vld [vmem:[%s155_s2] ss:$0 sm:$0xff] }
   0xa   :  { %44 = vmatpush.msra.mxu0 %v19_v4 }
   0xc   :  { %45 = vmatpush.msra.mxu0 %v18_v5 }
   0xe   :  { %46 = vmatpush.msra.mxu0 %v17_v6 }
  0x10   :  { %47 = vmatpush.msra.mxu0 %v16_v7 }
  0x11   :  { %70 = vmatmul.msk.f32.vlgmr.msra.gmra.mxu0 %vm28_vm0, %v15_v8 }
  0x8e   :  { %v49_v10 = vpop.f32.mrf.mxu0 }
  0x8f   :  { %v50_v11 = vadd.f32 %v72_v9, %v49_v10 }
  0x91   :  { %53 = vst.msk [vmem:[#allocation2] sm:$0xff] %vm52_vm1, %v50_v11 }
  0x92   :  { %64 = dma.vmem_to_hbm [thread:$0]  %s60_s6, 128, %s62_s9, [#allocation3]  }
  0x93   :  { %97 = dma.done.wait [#allocation3], 128  }
  0x94   :  { %98 = vsyncadd [#allocation3], 4294967168 }
  0x95   :  { %69 = vsyncpa [#allocation3], 1 }

</bundles_post_ra>
